<compile_context>
chip_gen: v5e
topology: v5e:2x2
jax: 0.10.0
libtpu: 0.0.40
codegen_flags: <defaults>
</compile_context>

<pallas_src>
import jax
import jax.numpy as jnp
import numpy as np
from jax.experimental import pallas as pl
from jax.experimental.pallas import tpu as pltpu


def _dma_copy_kernel(x_hbm, o_hbm, sem):
    # One contiguous HBM->HBM DMA of the whole (already reshaped) array.
    # No VMEM staging, no vreg round-trip: a single descriptor + wait.
    cp = pltpu.make_async_copy(x_hbm, o_hbm, sem)
    cp.start()
    cp.wait()


def classification_head_patches_transformer(x, num_columns, num_rows):
    """Forward pass of ClassificationHeadPatchesTransformer.

    Input x is NCHW (B, C, H, W), matching PyTorch; output is the row-major
    flat reinterpretation (1, C, H*num_rows, W*num_columns).
    """
    B, C, H, W = x.shape
    assert B == num_rows * num_columns, (
        "ClassificationHeadPatchesTransformer reshape requires "
        "B == num_rows * num_columns")

    out_shape = (1, C, H * num_rows, W * num_columns)
    total = B * C * H * W
    itemsize = jnp.dtype(x.dtype).itemsize

    # Metadata-only reshape of the contiguous NCHW data to the output view;
    # the Pallas kernel then only has to materialize an identical copy.
    x_view = jnp.reshape(x, out_shape)

    out = pl.pallas_call(
        _dma_copy_kernel,
        out_shape=jax.ShapeDtypeStruct(out_shape, x.dtype),
        in_specs=[pl.BlockSpec(memory_space=pl.ANY)],   # raw HBM ref, no auto-DMA
        out_specs=pl.BlockSpec(memory_space=pl.ANY),    # raw HBM ref, no auto-DMA
        scratch_shapes=[pltpu.SemaphoreType.DMA],
        cost_estimate=pl.CostEstimate(
            flops=0,
            transcendentals=0,
            bytes_accessed=2 * total * itemsize,
        ),
    )(x_view)

    return out


if __name__ == "__main__":
    # Module "parameters": just the patch-grid config.
    num_rows, num_columns = 2, 1

    # Small shapes consistent with the forward: B must equal num_rows*num_columns.
    B, C, H, W = num_rows * num_columns, 4, 16, 16

    key = jax.random.PRNGKey(0)
    x = jax.random.normal(key, (B, C, H, W), dtype=jnp.float32)

    z = classification_head_patches_transformer(x, num_columns, num_rows)
    z = jax.block_until_ready(z)

    # Reference: identical to PyTorch's x.reshape(C, H*nr, W*nc).unsqueeze(0)
    # on a contiguous NCHW tensor (row-major flat reinterpretation).
    z_ref = jnp.reshape(x, (C, H * num_rows, W * num_columns))[None]
    assert z.shape == (1, C, H * num_rows, W * num_columns)
    np.testing.assert_array_equal(np.asarray(z), np.asarray(z_ref))

    print("KERNEL_OK")
</pallas_src>

<mosaic_0001>
module attributes {stable_mosaic.version = 11 : i64} {
  func.func @_dma_copy_kernel(%arg0: memref<1x4x32x16xf32, #tpu.memory_space<any>>, %arg1: memref<1x4x32x16xf32, #tpu.memory_space<any>>, %arg2: memref<!tpu.dma_semaphore, #tpu.memory_space<semaphore_mem>>) attributes {dimension_semantics = [], scalar_prefetch = 0 : i64, scratch_operands = 1 : i64, tpu.core_type = #tpu.core_type<tc>} {
    tpu.enqueue_dma source(%arg0 : memref<1x4x32x16xf32, #tpu.memory_space<any>>) target(%arg1 : memref<1x4x32x16xf32, #tpu.memory_space<any>>) target_semaphore(%arg2 : memref<!tpu.dma_semaphore, #tpu.memory_space<semaphore_mem>>)
    tpu.wait_dma2 semaphore(%arg2 : memref<!tpu.dma_semaphore, #tpu.memory_space<semaphore_mem>>) src(%arg0 : memref<1x4x32x16xf32, #tpu.memory_space<any>>) dst(%arg1 : memref<1x4x32x16xf32, #tpu.memory_space<any>>)
    return
  }
}

</mosaic_0001>

<bundles_post_ra>
// kernel: tpu_custom_call.1
= control target key start
LH: loop header
LB: loop body
LE: loop exit
PB: predicated region body
PF: predicated region fallthrough
CT: control target
= control target key end

     0   :  { %s178_s0 = inlined_call_operand.vmem [shape: f32[1,4,32,16], index: 0, kind: input, shape index: {}]   ;;  %s179_s1 = inlined_call_operand.vmem [shape: f32[1,4,32,16], index: 1, kind: output, shape index: {}]  }
   0x1   :  { %v16_v0 = vld [vmem:[%s178_s0] sm:$0xff]  ;;  %v18_v1 = vld [vmem:[%s178_s0 + $0x8] sm:$0xff]  ;;  %v20_v2 = vld [vmem:[%s178_s0 + $0x10] sm:$0xff] }
   0x2   :  { %17 = vst [vmem:[%s179_s1] sm:$0xff] %v16_v0  ;;  %v22_v3 = vld [vmem:[%s178_s0 + $0x18] sm:$0xff]  ;;  %v24_v4 = vld [vmem:[%s178_s0 + $0x20] sm:$0xff]  ;;  %v26_v5 = vld [vmem:[%s178_s0 + $0x28] sm:$0xff] }
   0x3   :  { %19 = vst [vmem:[%s179_s1 + $0x8] sm:$0xff] %v18_v1  ;;  %v28_v6 = vld [vmem:[%s178_s0 + $0x30] sm:$0xff]  ;;  %v30_v7 = vld [vmem:[%s178_s0 + $0x38] sm:$0xff]  ;;  %v32_v8 = vld [vmem:[%s178_s0 + $0x40] sm:$0xff] }
   0x4   :  { %21 = vst [vmem:[%s179_s1 + $0x10] sm:$0xff] %v20_v2  ;;  %v34_v9 = vld [vmem:[%s178_s0 + $0x48] sm:$0xff]  ;;  %v36_v10 = vld [vmem:[%s178_s0 + $0x50] sm:$0xff]  ;;  %v38_v11 = vld [vmem:[%s178_s0 + $0x58] sm:$0xff] }
   0x5   :  { %23 = vst [vmem:[%s179_s1 + $0x18] sm:$0xff] %v22_v3  ;;  %v40_v12 = vld [vmem:[%s178_s0 + $0x60] sm:$0xff]  ;;  %v42_v13 = vld [vmem:[%s178_s0 + $0x68] sm:$0xff]  ;;  %v44_v14 = vld [vmem:[%s178_s0 + $0x70] sm:$0xff] }
   0x6   :  { %25 = vst [vmem:[%s179_s1 + $0x20] sm:$0xff] %v24_v4  ;;  %v46_v15 = vld [vmem:[%s178_s0 + $0x78] sm:$0xff] }
   0x7   :  { %27 = vst [vmem:[%s179_s1 + $0x28] sm:$0xff] %v26_v5 }
   0x8   :  { %29 = vst [vmem:[%s179_s1 + $0x30] sm:$0xff] %v28_v6 }
   0x9   :  { %31 = vst [vmem:[%s179_s1 + $0x38] sm:$0xff] %v30_v7 }
   0xa   :  { %33 = vst [vmem:[%s179_s1 + $0x40] sm:$0xff] %v32_v8 }
   0xb   :  { %35 = vst [vmem:[%s179_s1 + $0x48] sm:$0xff] %v34_v9 }
   0xc   :  { %37 = vst [vmem:[%s179_s1 + $0x50] sm:$0xff] %v36_v10 }
   0xd   :  { %39 = vst [vmem:[%s179_s1 + $0x58] sm:$0xff] %v38_v11 }
   0xe   :  { %41 = vst [vmem:[%s179_s1 + $0x60] sm:$0xff] %v40_v12 }
   0xf   :  { %43 = vst [vmem:[%s179_s1 + $0x68] sm:$0xff] %v42_v13 }
  0x10   :  { %45 = vst [vmem:[%s179_s1 + $0x70] sm:$0xff] %v44_v14 }
  0x11   :  { %47 = vst [vmem:[%s179_s1 + $0x78] sm:$0xff] %v46_v15 }
  0x12   :  { %53 = vsyncadd [#allocation2], 2048 }
  0x13   :  { %70 = dma.done.wait [#allocation2], 2048 }
  0x14   :  { %71 = vsyncadd [#allocation2], 4294965248 }
  0x15   :  { %59 = vsyncmov [#allocation2] }
  0x18   :  { %s60_s12 = vpop.sfrf %59 }
  0x19   :  { %p69_p0 = scmp.ne.s32.totalorder %s60_s12, 0 }
  0x1b   :  { %64 = shalt.err (%p69_p0)  }

</bundles_post_ra>
